<compile_context>
chip_gen: v7x
topology: tpu7x:2x2x1
jax: 0.10.0
libtpu: 0.0.40
codegen_flags: <defaults>
</compile_context>

<pallas_src>
import jax
import jax.numpy as jnp
from jax import lax
from jax.experimental import pallas as pl
from jax.experimental.pallas import tpu as pltpu

# ----------------------------- synthetic "cfg" --------------------------------
PATCH_SIZE = 14                      # MoGe ViT patch size (fixed in the module)
PTS_FEAT_DIM = 8                     # cfg.model.backbone.pts_feat_dim
ENC_DIM = 32                         # self.moge.backbone.embed_dim (1024 for vit-l; small here)
GAUSS_NOVEL_FRAMES = [1]             # cfg.model.gauss_novel_frames
USING_FRAMES = [0] + GAUSS_NOVEL_FRAMES
SHIFT_RAYS_HALF_PIXEL = 0.0          # cfg.model.shift_rays_half_pixel == 'zero'

IMAGE_MEAN = jnp.array([0.485, 0.456, 0.406], dtype=jnp.float32)
IMAGE_STD = jnp.array([0.229, 0.224, 0.225], dtype=jnp.float32)

LANE_TILE_TARGET = 16384             # lane-axis tile target for elementwise kernels


def _round_up(x, m):
    return ((x + m - 1) // m) * m


def _lane_tiling(n, target=LANE_TILE_TARGET):
    """Return (n_total, tile). Prefer no padding: full-extent block, or a
    multiple-of-128 divisor of n; pad only as a last resort."""
    if n <= target:
        return n, n                                  # single full-extent tile (always legal)
    for tile in range(target, 0, -128):              # largest 128-multiple divisor <= target
        if n % tile == 0:
            return n, tile
    return _round_up(n, target), target              # fallback: pad


# ------------------------- kernel 1: image normalize ---------------------------
def _normalize_kernel(x_ref, m_ref, inv_s_ref, o_ref):
    # x: (B*C, TILE_N); m / inv_s: (B*C, 1) broadcast along the lane axis.
    o_ref[...] = (x_ref[...] - m_ref[...]) * inv_s_ref[...]


def normalize_image(rgbs):
    """(rgbs - image_mean) / image_std, NCHW in / NCHW out."""
    B, C, H, W = rgbs.shape
    N = H * W
    BC = B * C
    n_tot, tile = _lane_tiling(N)

    x = rgbs.reshape(BC, N).astype(jnp.float32)
    if n_tot != N:
        x = jnp.pad(x, ((0, 0), (0, n_tot - N)))
    m = jnp.tile(IMAGE_MEAN, (B,)).reshape(BC, 1)
    inv_s = jnp.tile(1.0 / IMAGE_STD, (B,)).reshape(BC, 1)   # multiply, not divide

    out = pl.pallas_call(
        _normalize_kernel,
        out_shape=jax.ShapeDtypeStruct((BC, n_tot), jnp.float32),
        grid=(n_tot // tile,),
        in_specs=[
            pl.BlockSpec((BC, tile), lambda j: (0, j)),
            pl.BlockSpec((BC, 1), lambda j: (0, 0)),
            pl.BlockSpec((BC, 1), lambda j: (0, 0)),
        ],
        out_specs=pl.BlockSpec((BC, tile), lambda j: (0, j)),
        compiler_params=pltpu.CompilerParams(dimension_semantics=("parallel",)),
    )(x, m, inv_s)
    if n_tot != N:
        out = out[:, :N]
    return out.reshape(B, C, H, W)


# ------------------- kernel 2: x @ W + bias'  (pts_feat_head) ------------------
def _pts_feat_kernel(x_ref, w_ref, bias_ref, o_ref):
    # Single K step: no accumulator scratch, no init/finalize.  W is resident
    # in VMEM (constant index_map) so it is DMA'd from HBM exactly once.
    o_ref[...] = (
        jnp.dot(x_ref[...], w_ref[...], preferred_element_type=jnp.float32)
        + bias_ref[...]
    )


def pts_feat_head(enc, cls_tok, w, b, *, tp_target=256):
    """(enc + cls) @ W + b, computed as enc @ W + (cls @ W + b).

    enc: (B, P, D), cls_tok: (B, D), w: (D, OD), b: (OD,) -> (B, P, OD), f32.
    """
    B, P, K = enc.shape
    OD = w.shape[1]

    # Fold the cls token into a per-batch bias (tiny (B,D)@(D,OD) done in JAX):
    # removes the (B*P, D) repeat and the per-tile VPU add entirely.
    bias_eff = cls_tok.astype(jnp.float32) @ w.astype(jnp.float32) + b[None, :]

    # --- tiling / padding -------------------------------------------------
    od_pad = _round_up(OD, 256)          # lane-dense + full 256-wide MXU passes
    k_pad = _round_up(K, 128)            # single full-extent K block (no reduction axis)
    p_pad = _round_up(P, 16)             # bf16 sublane packing
    tp = min(tp_target, p_pad)
    if B == 1 and p_pad // tp < 2 and p_pad >= 32:
        tp = max(16, (p_pad // 2 // 16) * 16)   # >=2 parallel blocks for v7x's 2 TCs
    p_pad = _round_up(p_pad, tp)

    # --- pad operands (zeros do not change the matmul result) --------------
    x = enc.astype(jnp.bfloat16)
    if (p_pad, k_pad) != (P, K):
        x = jnp.zeros((B, p_pad, k_pad), jnp.bfloat16).at[:, :P, :K].set(x)
    wp = w.astype(jnp.bfloat16)
    if (k_pad, od_pad) != (K, OD):
        wp = jnp.zeros((k_pad, od_pad), jnp.bfloat16).at[:K, :OD].set(wp)
    bias_p = jnp.zeros((B, 1, od_pad), jnp.float32).at[:, 0, :OD].set(bias_eff)

    grid = (B, p_pad // tp)

    out = pl.pallas_call(
        _pts_feat_kernel,
        out_shape=jax.ShapeDtypeStruct((B, p_pad, od_pad), jnp.float32),
        grid=grid,
        in_specs=[
            pl.BlockSpec((None, tp, k_pad), lambda bb, i: (bb, i, 0)),   # x tile
            pl.BlockSpec((k_pad, od_pad), lambda bb, i: (0, 0)),         # W: VMEM-resident
            pl.BlockSpec((None, 1, od_pad), lambda bb, i: (bb, 0, 0)),   # folded bias
        ],
        out_specs=pl.BlockSpec((None, tp, od_pad), lambda bb, i: (bb, i, 0)),
        compiler_params=pltpu.CompilerParams(
            dimension_semantics=("parallel", "parallel"),
            vmem_limit_bytes=32 * 1024 * 1024,
        ),
    )(x, wp, bias_p)
    return out[:, :P, :OD]


# ---------- kernel 3: fused ray-gen + depth = z + shift + back-projection ------
def backproject_pts(z_flat, shift, inv_k3, H, W, shift_half_pixel=0.0):
    """z_flat: (B,1,N) f32, shift: (B,), inv_k3: (B,3,3)
    -> cam3 (B,3,N), depth (B,1,N).

    Rays are generated in-kernel from a lane iota (no (3,N)/(B,3,N) HBM tensors);
    cam_xyz and depth are emitted as one (B,4,N) output."""
    B = z_flat.shape[0]
    N = H * W
    n_tot, tile = _lane_tiling(N)
    zf = z_flat.astype(jnp.float32)
    if n_tot != N:
        zf = jnp.pad(zf, ((0, 0), (0, 0), (0, n_tot - N)))

    inv_w = 1.0 / float(W)
    inv_h = 1.0 / float(H)

    def kernel(invk_ref, shift_ref, z_ref, out_ref):
        b = pl.program_id(0)
        j = pl.program_id(1)
        # flattened pixel index for this lane tile
        lane = lax.broadcasted_iota(jnp.int32, (1, tile), 1).astype(jnp.float32)
        idx = lane + (j * tile).astype(jnp.float32)
        # exact px, py: (idx + 0.5)/W is never an integer, so floor is robust
        py = jnp.floor((idx + 0.5) * inv_w)
        px = idx - py * float(W)
        u = (px + 0.5 + shift_half_pixel) * inv_w
        v = (py + 0.5 + shift_half_pixel) * inv_h
        d = z_ref[...] + shift_ref[b]                       # (1, tile) depth
        rx = invk_ref[b, 0] * u + invk_ref[b, 1] * v + invk_ref[b, 2]
        ry = invk_ref[b, 3] * u + invk_ref[b, 4] * v + invk_ref[b, 5]
        rz = invk_ref[b, 6] * u + invk_ref[b, 7] * v + invk_ref[b, 8]
        out_ref[0:1, :] = rx * d
        out_ref[1:2, :] = ry * d
        out_ref[2:3, :] = rz * d
        out_ref[3:4, :] = d

    out = pl.pallas_call(
        kernel,
        out_shape=jax.ShapeDtypeStruct((B, 4, n_tot), jnp.float32),
        grid=(B, n_tot // tile),
        in_specs=[
            pl.BlockSpec(memory_space=pltpu.MemorySpace.SMEM),      # inv_K (B, 9) scalars
            pl.BlockSpec(memory_space=pltpu.MemorySpace.SMEM),      # shift (B,) scalars
            pl.BlockSpec((None, 1, tile), lambda b, j: (b, 0, j)),  # z
        ],
        out_specs=pl.BlockSpec((None, 4, tile), lambda b, j: (b, 0, j)),
        compiler_params=pltpu.CompilerParams(
            dimension_semantics=("parallel", "parallel")),
    )(inv_k3.reshape(B, 9).astype(jnp.float32), shift.astype(jnp.float32), zf)

    cam3 = out[:, :3, :N]
    depth = out[:, 3:4, :N]
    return cam3, depth


# ------------------------------- glue helpers ----------------------------------
def synth_moge_outputs(frame_id, B, P, H, W):
    # TODO(synk): the MoGe ViT-L backbone + conv head are external pretrained
    # submodules (checkpoint 'Ruicheng/moge-vitl'); their outputs (patch tokens,
    # cls token, points, mask) are synthesized deterministically here.
    key = jax.random.PRNGKey(100 + frame_id)
    k1, k2, k3, k4 = jax.random.split(key, 4)
    feats = 0.1 * jax.random.normal(k1, (B, P, ENC_DIM), jnp.float32)
    cls_tok = 0.1 * jax.random.normal(k2, (B, ENC_DIM), jnp.float32)
    points = jax.random.normal(k3, (B, H, W, 3), jnp.float32)
    points = points.at[..., 2].add(2.0)            # keep depth mostly positive
    mask = jax.random.uniform(k4, (B, H, W), jnp.float32)
    return feats, cls_tok, points, mask


def init_params(key):
    kw, kb = jax.random.split(key)
    out_dim = PTS_FEAT_DIM * PATCH_SIZE ** 2
    w = jax.random.normal(kw, (ENC_DIM, out_dim), jnp.float32) / jnp.sqrt(ENC_DIM)
    b = 0.01 * jax.random.normal(kb, (out_dim,), jnp.float32)
    return {"pts_feat_w": w, "pts_feat_b": b}


# --------------------------------- forward -------------------------------------
def moge_mv_encoder_forward(inputs, params):
    outputs = {}
    for frame_id in USING_FRAMES:
        rgbs = inputs[("color_aug", frame_id, 0)]          # (B, 3, H, W), NCHW
        gt_K = inputs[("K_src", 0)]                        # (B, 3, 3), normalized
        inv_K = jnp.linalg.inv(gt_K.astype(jnp.float32))
        B, C, H, W = rgbs.shape
        patch_h, patch_w = H // PATCH_SIZE, W // PATCH_SIZE
        P = patch_h * patch_w
        N = H * W

        # (rgbs - image_mean) / image_std   [Pallas kernel 1, lane-tiled]
        rgbs_n = normalize_image(rgbs)

        # F.interpolate(rgbs, (patch_h*14, patch_w*14), bilinear, antialias): identity
        # here because H, W are multiples of 14.
        # TODO(synk): antialiased bilinear resize needed when H, W are not multiples of 14.

        feats, cls_tok, points, mask = synth_moge_outputs(frame_id, B, P, H, W)

        # remap_output == 'linear' -> points pass through unchanged.
        z = points[..., 2]                                  # (B, H, W)
        _ = mask > 0.5                                      # only feeds recover_focal_shift

        # TODO(synk): recover_focal_shift is a nonlinear least-squares solve over the
        # point map; replaced by a deterministic surrogate shift (keeps depth > 0).
        shift = jnp.maximum(1e-2 - jnp.min(z, axis=(1, 2)), 0.0)   # (B,)

        # depth = z + shift; cam = depth * (inv_K @ [u, v, 1])   [Pallas kernel 3,
        # rays generated in-kernel from iota, single (B,4,N) output]
        cam3, depth_flat = backproject_pts(
            z.reshape(B, 1, N), shift, inv_K[:, :3, :3], H, W,
            shift_half_pixel=SHIFT_RAYS_HALF_PIXEL,
        )

        # Module contract is (B, N, 3); the channel-minor relayout stays in the
        # wrapper so the kernels remain lane-dense end-to-end.
        pts3d = jnp.transpose(cam3, (0, 2, 1))                     # (B, N, 3)
        pts_depth_origin = depth_flat.reshape(B, 1, H, W)          # (B, 1, H, W)

        if frame_id != 0:
            outputs[("depth_pred", frame_id)] = pts_depth_origin
            continue

        pts_rgb = jnp.transpose(rgbs_n.reshape(B, C, N), (0, 2, 1))  # (B, N, 3)

        # pts_feat_head: enc @ W + (cls @ W + b)   [Pallas kernel 2, W-resident MXU]
        pts_feat = pts_feat_head(
            feats, cls_tok, params["pts_feat_w"], params["pts_feat_b"]
        )                                                   # (B, P, 196*d)
        pts_feat = pts_feat.reshape(B, P * PATCH_SIZE ** 2, PTS_FEAT_DIM)

        outputs[("pts3d", frame_id)] = pts3d
        outputs[("pts_feat", frame_id)] = pts_feat
        outputs[("pts_rgb", frame_id)] = pts_rgb
        outputs[("depth_pred", frame_id)] = pts_depth_origin
    return outputs


# ----------------------------------- main ---------------------------------------
if __name__ == "__main__":
    key = jax.random.PRNGKey(0)
    kp, ki0, ki1 = jax.random.split(key, 3)
    params = init_params(kp)

    B, C, H, W = 2, 3, 28, 28          # H, W multiples of 14 -> 2x2 = 4 patches
    K = jnp.array([[1.2, 0.0, 0.5],
                   [0.0, 1.2, 0.5],
                   [0.0, 0.0, 1.0]], dtype=jnp.float32)
    inputs = {
        ("color_aug", 0, 0): jax.random.uniform(ki0, (B, C, H, W), jnp.float32),
        ("color_aug", 1, 0): jax.random.uniform(ki1, (B, C, H, W), jnp.float32),
        ("K_src", 0): jnp.tile(K, (B, 1, 1)),
    }

    outputs = moge_mv_encoder_forward(inputs, params)
    outputs = jax.tree_util.tree_map(jax.block_until_ready, outputs)

    assert outputs[("pts3d", 0)].shape == (B, H * W, 3)
    assert outputs[("pts_feat", 0)].shape == (B, H * W, PTS_FEAT_DIM)
    assert outputs[("pts_rgb", 0)].shape == (B, H * W, 3)
    assert outputs[("depth_pred", 0)].shape == (B, 1, H, W)
    assert outputs[("depth_pred", 1)].shape == (B, 1, H, W)
    for v in jax.tree_util.tree_leaves(outputs):
        assert bool(jnp.all(jnp.isfinite(v)))

    print("KERNEL_OK")
</pallas_src>

<mosaic_0001>
module attributes {stable_mosaic.version = 11 : i64} {
  func.func @_normalize_kernel(%arg0: i32, %arg1: memref<6x784xf32, #tpu.memory_space<vmem>>, %arg2: memref<6x1xf32, #tpu.memory_space<vmem>>, %arg3: memref<6x1xf32, #tpu.memory_space<vmem>>, %arg4: memref<6x784xf32, #tpu.memory_space<vmem>>) attributes {dimension_semantics = [#tpu.dimension_semantics<parallel>], iteration_bounds = array<i64: 1>, scalar_prefetch = 0 : i64, scratch_operands = 0 : i64, tpu.core_type = #tpu.core_type<tc>, window_params = [{transform_indices = @transform_0, window_bounds = array<i64: 6, 784>}, {pipeline_mode = #tpu.pipeline_mode<synchronous>, transform_indices = @transform_1, window_bounds = array<i64: 6, 1>}, {pipeline_mode = #tpu.pipeline_mode<synchronous>, transform_indices = @transform_2, window_bounds = array<i64: 6, 1>}, {transform_indices = @transform_3, window_bounds = array<i64: 6, 784>}]} {
    %c0 = arith.constant 0 : index
    %c0_0 = arith.constant 0 : index
    %0 = vector.load %arg1[%c0, %c0_0] : memref<6x784xf32, #tpu.memory_space<vmem>>, vector<6x784xf32>
    %c0_1 = arith.constant 0 : index
    %c0_2 = arith.constant 0 : index
    %1 = vector.load %arg2[%c0_1, %c0_2] : memref<6x1xf32, #tpu.memory_space<vmem>>, vector<6x1xf32>
    %2 = vector.broadcast %1 : vector<6x1xf32> to vector<6x784xf32>
    %3 = arith.subf %0, %2 : vector<6x784xf32>
    %c0_3 = arith.constant 0 : index
    %c0_4 = arith.constant 0 : index
    %4 = vector.load %arg3[%c0_3, %c0_4] : memref<6x1xf32, #tpu.memory_space<vmem>>, vector<6x1xf32>
    %5 = vector.broadcast %4 : vector<6x1xf32> to vector<6x784xf32>
    %6 = arith.mulf %3, %5 : vector<6x784xf32>
    %c0_5 = arith.constant 0 : index
    %c0_6 = arith.constant 0 : index
    %7 = vector.load %arg4[%c0_5, %c0_6] : memref<6x784xf32, #tpu.memory_space<vmem>>, vector<6x784xf32>
    tpu.vector_store %arg4[%c0_5, %c0_6], %6 {strides = array<i32>} : memref<6x784xf32, #tpu.memory_space<vmem>>, vector<6x784xf32>,
    return
  }
  func.func @transform_0(%arg0: i32) -> (i32, i32) {
    %c0_i32 = arith.constant 0 : i32
    %c0_i32_0 = arith.constant 0 : i32
    return %c0_i32, %arg0 : i32, i32
  }
  func.func @transform_1(%arg0: i32) -> (i32, i32) {
    %c0_i32 = arith.constant 0 : i32
    %c0_i32_0 = arith.constant 0 : i32
    %c0_i32_1 = arith.constant 0 : i32
    return %c0_i32, %c0_i32_0 : i32, i32
  }
  func.func @transform_2(%arg0: i32) -> (i32, i32) {
    %c0_i32 = arith.constant 0 : i32
    %c0_i32_0 = arith.constant 0 : i32
    %c0_i32_1 = arith.constant 0 : i32
    return %c0_i32, %c0_i32_0 : i32, i32
  }
  func.func @transform_3(%arg0: i32) -> (i32, i32) {
    %c0_i32 = arith.constant 0 : i32
    %c0_i32_0 = arith.constant 0 : i32
    return %c0_i32, %arg0 : i32, i32
  }
}

</mosaic_0001>

<bundles_post_ra>
// kernel: tpu_custom_call.1
= control target key start
LH: loop header
LB: loop body
LE: loop exit
PB: predicated region body
PF: predicated region fallthrough
CT: control target
= control target key end

     0   :  { %8 = vsyncpa [#allocation3], 0  ;;  %s189_s0 = inlined_call_operand.hbm [shape: f32[6,784], index: 0, kind: input, shape index: {}]   ;;  %s190_s1 = inlined_call_operand.vmem [shape: f32[6,1], index: 1, kind: input, shape index: {}]   ;;  %s191_s2 = inlined_call_operand.vmem [shape: f32[6,1], index: 2, kind: input, shape index: {}]   ;;  %s192_s3 = inlined_call_operand.hbm [shape: f32[6,784], index: 3, kind: output, shape index: {}]  }
   0x1   :  { %9 = vsyncpa [#allocation4], 0  ;;  %s135_s12 = smov [#allocation2]   ;;  %s87_s16 = scalar_lea.hbm %s189_s0, 896 }
   0x2   :  { %s16_s13 = sshll.u32 %s135_s12, 4  ;;  %p88_p0 = scmp.ne.s32.totalorder %s189_s0, %s87_s16  ;;  %s17_s13 = int_to_ptr.vmem [resolvable:$true] %s16_s13 }
   0x3   :  { %p91_p1 = scmp.lt.u32.totalorder %s87_s16, %s189_s0 }
   0x5   :  { %p93_p2 = pnand %p91_p1, %p88_p0 }
   0x7   :  { %96 = shalt.err (!%p93_p2)
}
   0x8   :  { %s97_s21 = scalar_lea.vmem %s17_s13, 896  ;;  %p102_p4 = scmp.lt.s32.totalorder %s17_s13, %s17_s13 }
   0x9   :  { %p98_p3 = scmp.ne.s32.totalorder %s17_s13, %s97_s21  ;;  %p103_p5 = scmp.lt.s32.totalorder %s97_s21, %s97_s21 }
   0xb   :  { %p104_p6 = por %p103_p5, %p102_p4 }
   0xd   :  { %p105_p7 = pnand %p104_p6, %p98_p3 }
   0xf   :  { %108 = shalt.err (!%p105_p7)
}
  0x10   :  { %19 = dma.hbm_to_vmem [thread:$0]  %s189_s0, 896, %s17_s13, [#allocation3]  }
  0x11   :  { %131 = dma.done.wait [#allocation3], 896  }
  0x12   :  { %132 = vsyncadd [#allocation3], 4294966400  ;;  %v136_v0 = vmov 0   ;;  %v34_v1 = vld [vmem:[%s190_s1] sm:$0x3f]  ;;  %s137_s0 = smov [#allocation5]  }
  0x13   :  { %86 = vset.pattern.permute.xlu0 %v136_v0  ;;  %v47_v2 = vld [vmem:[%s191_s2] sm:$0x3f]  ;;  %v28_v4 = vld [vmem:[#allocation2 + $0x8] sm:$0x3f]  ;;  %v29_v6 = vld [vmem:[#allocation2 + $0x10] sm:$0x3f] }
  0x14   :  { %37 = vperm.xlu0 %86, %v34_v1   ;;  %v27_v3 = vld [vmem:[#allocation2] sm:$0x3f]  ;;  %v30_v7 = vld [vmem:[#allocation2 + $0x18] sm:$0x3f]  ;;  %v32_v9 = vld [vmem:[#allocation2 + $0x28] sm:$0x3f] }
  0x15   :  { %v31_v8 = vld [vmem:[#allocation2 + $0x20] sm:$0x3f]  ;;  %v33_v10 = vld [vmem:[#allocation2 + $0x30] sm:$0x3f]  ;;  %s74_s1 = sshll.u32 %s137_s0, 4  ;;  %vm66_vm0 = vcmask 128000   ;;  %s75_s1 = int_to_ptr.vmem [resolvable:$true] %s74_s1 }
  0x16   :  { %s109_s2 = scalar_lea.vmem %s75_s1, 896  ;;  %p114_p9 = scmp.lt.s32.totalorder %s75_s1, %s75_s1 }
  0x17   :  { %p110_p8 = scmp.ne.s32.totalorder %s75_s1, %s109_s2  ;;  %p115_p10 = scmp.lt.s32.totalorder %s109_s2, %s109_s2 }
  0x18   :  { %50 = vperm.xlu0 %86, %v47_v2  }
  0x19   :  { %p116_p11 = por %p115_p10, %p114_p9 }
  0x1b   :  { %p117_p12 = pnand %p116_p11, %p110_p8 }
  0x93   :  { %v38_v5 = vpop.permute.xlu0 %37 }
  0x94   :  { %v40_v11 = vsub.f32 %v27_v3, %v38_v5  ;;  %v41_v12 = vsub.f32 %v28_v4, %v38_v5  ;;  %v42_v13 = vsub.f32 %v29_v6, %v38_v5  ;;  %v43_v14 = vsub.f32 %v30_v7, %v38_v5 }
  0x95   :  { %v44_v16 = vsub.f32 %v31_v8, %v38_v5  ;;  %v45_v17 = vsub.f32 %v32_v9, %v38_v5  ;;  %v46_v18 = vsub.f32 %v33_v10, %v38_v5 }
  0x97   :  { %v51_v15 = vpop.permute.xlu0 %50 }
  0x98   :  { %v53_v19 = vmul.f32 %v51_v15, %v40_v11  ;;  %v54_v20 = vmul.f32 %v51_v15, %v41_v12  ;;  %v55_v21 = vmul.f32 %v51_v15, %v42_v13  ;;  %v56_v22 = vmul.f32 %v51_v15, %v43_v14 }
  0x99   :  { %v57_v23 = vmul.f32 %v51_v15, %v44_v16  ;;  %v58_v24 = vmul.f32 %v51_v15, %v45_v17  ;;  %v59_v25 = vmul.f32 %v51_v15, %v46_v18 }
  0x9a   :  { %60 = vst [vmem:[#allocation5] sm:$0x3f] %v53_v19  ;;  %61 = vst [vmem:[#allocation5 + $0x8] sm:$0x3f] %v54_v20 }
  0x9b   :  { %62 = vst [vmem:[#allocation5 + $0x10] sm:$0x3f] %v55_v21  ;;  %63 = vst [vmem:[#allocation5 + $0x18] sm:$0x3f] %v56_v22 }
  0x9c   :  { %64 = vst [vmem:[#allocation5 + $0x20] sm:$0x3f] %v57_v23  ;;  %65 = vst [vmem:[#allocation5 + $0x28] sm:$0x3f] %v58_v24 }
  0x9d   :  { %67 = vst.msk [vmem:[#allocation5 + $0x30] sm:$0x3f] %vm66_vm0, %v59_v25 }
  0x9e   :  { %120 = shalt.err (!%p117_p12)
}
  0x9f   :  { %s121_s30 = scalar_lea.hbm %s192_s3, 896 }
  0xa0   :  { %p122_p13 = scmp.ne.s32.totalorder %s192_s3, %s121_s30  ;;  %p125_p0 = scmp.lt.u32.totalorder %s121_s30, %s192_s3 }
  0xa2   :  { %p127_p1 = pnand %p125_p0, %p122_p13 }
  0xa4   :  { %130 = shalt.err (!%p127_p1)
}
  0xa5   :  { %77 = dma.vmem_to_hbm [thread:$0]  %s75_s1, 896, %s192_s3, [#allocation4]  }
  0xa6   :  { %133 = dma.done.wait [#allocation4], 896  }
  0xa7   :  { %134 = vsyncadd [#allocation4], 4294966400 }
  0xa8   :  { %81 = vsyncpa [#allocation3], 1 }
  0xa9   :  { %82 = vsyncpa [#allocation4], 1 }

</bundles_post_ra>
